<compile_context>
chip_gen: v6e
topology: v6e:2x2x1
jax: 0.10.0
libtpu: 0.0.40
codegen_flags: <defaults>
</compile_context>

<pallas_src>
import jax
import jax.numpy as jnp
from jax import lax
from jax.experimental import pallas as pl
from jax.experimental.pallas import tpu as pltpu


_LANE_TILE_CAP = 512                    # max W-tile (lanes), multiple of 128
_PLANE_BUDGET_BYTES = 512 * 1024        # budget for one (th, tw) disparity plane
_BLOCK_BUDGET_BYTES = 6 * 1024 * 1024   # budget for one (tD, th, tw) input block
_MAX_UNROLL = 32                        # cap on the in-kernel unrolled D loop
_VMEM_LIMIT_BYTES = 32 * 1024 * 1024    # fits 2x block + out bufs on all gens


def _pick_aligned_tile(n, align, cap):
    """Largest multiple of `align` that divides `n` and is <= cap.

    Falls back to the full dimension when `n` is not `align`-divisible
    (a block dim equal to the full array dim is always legal on TPU)."""
    if n % align != 0:
        return n
    best = align
    t = 2 * align
    limit = min(n, cap)
    while t <= limit:
        if n % t == 0:
            best = t
        t += align
    return best


def _pick_divisor(n, cap):
    """Largest divisor of `n` that is <= cap (at least 1)."""
    best = 1
    for t in range(1, min(n, cap) + 1):
        if n % t == 0:
            best = t
    return best


def _disparity_regression_kernel(x_ref, o_ref):
    # x_ref: (tD, th, tw) slab for one (batch, H-tile, W-tile, D-tile) step.
    # o_ref: (th, tw) float32 output tile, resident across the D grid axis.
    tD = x_ref.shape[0]
    db = pl.program_id(3)
    d0 = (db * tD).astype(jnp.float32)   # hoist base-offset int->float convert

    def body(d, acc):
        # Scalar disparity weight d_global = db * tD + d (broadcast multiply,
        # no block-sized iota tensor is materialized).
        w = d0 + d.astype(jnp.float32)
        return acc + x_ref[d].astype(jnp.float32) * w

    partial = lax.fori_loop(0, tD, body,
                            jnp.zeros(o_ref.shape, jnp.float32),
                            unroll=True)

    @pl.when(db == 0)
    def _():
        o_ref[...] = partial

    @pl.when(db > 0)
    def _():
        o_ref[...] = o_ref[...] + partial


def disparity_regression(x, maxdisp, *,
                         plane_budget_bytes=_PLANE_BUDGET_BYTES,
                         block_budget_bytes=_BLOCK_BUDGET_BYTES):
    """x: (B, maxdisp, H, W) -> (B, H, W) float32 weighted disparity sum."""
    B, D, H, W = x.shape
    assert D == maxdisp, "channel dim of x must equal maxdisp"
    itemsize = jnp.dtype(x.dtype).itemsize

    # Lane-dense W tile (multiple of 128 when possible, else full W).
    tw = _pick_aligned_tile(W, 128, _LANE_TILE_CAP)
    # Sublane H tile (multiple of 8 when possible, else full H), budget-capped.
    th_cap = max(8, plane_budget_bytes // max(tw * itemsize, 1))
    th = _pick_aligned_tile(H, 8, th_cap)
    # Disparity tile: divisor of D so the (tD, th, tw) block fits the budget.
    td_cap = max(1, min(block_budget_bytes // max(th * tw * itemsize, 1),
                        _MAX_UNROLL))
    tD = _pick_divisor(D, td_cap)

    grid = (B, H // th, W // tw, D // tD)

    cost = pl.CostEstimate(
        flops=2 * B * D * H * W,
        transcendentals=0,
        bytes_accessed=B * D * H * W * itemsize + B * H * W * 4,
    )

    return pl.pallas_call(
        _disparity_regression_kernel,
        out_shape=jax.ShapeDtypeStruct((B, H, W), jnp.float32),
        grid_spec=pltpu.PrefetchScalarGridSpec(
            num_scalar_prefetch=0,
            grid=grid,
            in_specs=[
                pl.BlockSpec((pl.Squeezed(), tD, th, tw),
                             lambda b, i, j, k: (b, k, i, j)),
            ],
            out_specs=pl.BlockSpec((pl.Squeezed(), th, tw),
                                   lambda b, i, j, k: (b, i, j)),
        ),
        compiler_params=pltpu.CompilerParams(
            dimension_semantics=("parallel", "parallel", "parallel",
                                 "arbitrary"),
            vmem_limit_bytes=_VMEM_LIMIT_BYTES,
        ),
        cost_estimate=cost,
    )(x)


def disparity_regression_reference(x, maxdisp):
    """Pure-JAX reference matching the PyTorch forward (float32 output)."""
    disp = jnp.arange(0, maxdisp, dtype=jnp.float32).reshape(1, maxdisp, 1, 1)
    return jnp.sum(x.astype(jnp.float32) * disp, axis=1)


if __name__ == "__main__":
    key = jax.random.PRNGKey(0)
    k1, k2 = jax.random.split(key)

    # Test 1: small shape consistent with (B, maxdisp, H, W); input is a
    # softmax over disparities, as DisparityRegression is normally used.
    B, maxdisp, H, W = 2, 8, 16, 16
    logits = jax.random.normal(k1, (B, maxdisp, H, W), dtype=jnp.float32)
    x = jax.nn.softmax(logits, axis=1)

    out = jax.block_until_ready(disparity_regression(x, maxdisp))
    ref = disparity_regression_reference(x, maxdisp)
    assert out.shape == (B, H, W)
    assert out.dtype == jnp.float32
    assert jnp.allclose(out, ref, atol=1e-5, rtol=1e-5)

    # Test 2: lane-dense W (multiple of 128) with a deliberately tiny block
    # budget so the disparity axis is split across grid steps, exercising the
    # resident-accumulator (pl.when init / add) reduction path.
    B2, D2, H2, W2 = 1, 12, 16, 256
    logits2 = jax.random.normal(k2, (B2, D2, H2, W2), dtype=jnp.float32)
    x2 = jax.nn.softmax(logits2, axis=1)

    out2 = jax.block_until_ready(
        disparity_regression(x2, D2, block_budget_bytes=64 * 1024))
    ref2 = disparity_regression_reference(x2, D2)
    assert out2.shape == (B2, H2, W2)
    assert jnp.allclose(out2, ref2, atol=1e-4, rtol=1e-5)

    print("KERNEL_OK")
</pallas_src>

<mosaic_0001>
module attributes {stable_mosaic.version = 11 : i64} {
  func.func @_disparity_regression_kernel(%arg0: i32, %arg1: i32, %arg2: i32, %arg3: i32, %arg4: memref<1x8x16x16xf32, #tpu.memory_space<vmem>>, %arg5: memref<1x16x16xf32, #tpu.memory_space<vmem>>) attributes {dimension_semantics = [#tpu.dimension_semantics<parallel>, #tpu.dimension_semantics<parallel>, #tpu.dimension_semantics<parallel>, #tpu.dimension_semantics<arbitrary>], iteration_bounds = array<i64: 2, 1, 1, 1>, scalar_prefetch = 0 : i64, scratch_operands = 0 : i64, tpu.core_type = #tpu.core_type<tc>, window_params = [{transform_indices = @transform_0, window_bounds = array<i64: 1, 8, 16, 16>}, {transform_indices = @transform_1, window_bounds = array<i64: 1, 16, 16>}]} {
    %c8_i32 = arith.constant 8 : i32
    %0 = arith.muli %arg3, %c8_i32 : i32
    %1 = arith.sitofp %0 : i32 to f32
    %cst = arith.constant 0.000000e+00 : f32
    %2 = vector.broadcast %cst : f32 to vector<16x16xf32>
    %c0_i32 = arith.constant 0 : i32
    %3 = arith.sitofp %c0_i32 : i32 to f32
    %4 = arith.addf %1, %3 : f32
    %c0 = arith.constant 0 : index
    %5 = arith.index_cast %c0_i32 : i32 to index
    %c0_0 = arith.constant 0 : index
    %c0_1 = arith.constant 0 : index
    %6 = vector.load %arg4[%c0, %5, %c0_0, %c0_1] : memref<1x8x16x16xf32, #tpu.memory_space<vmem>>, vector<1x1x16x16xf32>
    %7 = vector.shape_cast %6 : vector<1x1x16x16xf32> to vector<16x16xf32>
    %8 = vector.broadcast %4 : f32 to vector<16x16xf32>
    %9 = arith.mulf %7, %8 : vector<16x16xf32>
    %10 = arith.addf %2, %9 : vector<16x16xf32>
    %c1_i32 = arith.constant 1 : i32
    %11 = arith.sitofp %c1_i32 : i32 to f32
    %12 = arith.addf %1, %11 : f32
    %c0_2 = arith.constant 0 : index
    %13 = arith.index_cast %c1_i32 : i32 to index
    %c0_3 = arith.constant 0 : index
    %c0_4 = arith.constant 0 : index
    %14 = vector.load %arg4[%c0_2, %13, %c0_3, %c0_4] : memref<1x8x16x16xf32, #tpu.memory_space<vmem>>, vector<1x1x16x16xf32>
    %15 = vector.shape_cast %14 : vector<1x1x16x16xf32> to vector<16x16xf32>
    %16 = vector.broadcast %12 : f32 to vector<16x16xf32>
    %17 = arith.mulf %15, %16 : vector<16x16xf32>
    %18 = arith.addf %10, %17 : vector<16x16xf32>
    %c2_i32 = arith.constant 2 : i32
    %19 = arith.sitofp %c2_i32 : i32 to f32
    %20 = arith.addf %1, %19 : f32
    %c0_5 = arith.constant 0 : index
    %21 = arith.index_cast %c2_i32 : i32 to index
    %c0_6 = arith.constant 0 : index
    %c0_7 = arith.constant 0 : index
    %22 = vector.load %arg4[%c0_5, %21, %c0_6, %c0_7] : memref<1x8x16x16xf32, #tpu.memory_space<vmem>>, vector<1x1x16x16xf32>
    %23 = vector.shape_cast %22 : vector<1x1x16x16xf32> to vector<16x16xf32>
    %24 = vector.broadcast %20 : f32 to vector<16x16xf32>
    %25 = arith.mulf %23, %24 : vector<16x16xf32>
    %26 = arith.addf %18, %25 : vector<16x16xf32>
    %c3_i32 = arith.constant 3 : i32
    %27 = arith.sitofp %c3_i32 : i32 to f32
    %28 = arith.addf %1, %27 : f32
    %c0_8 = arith.constant 0 : index
    %29 = arith.index_cast %c3_i32 : i32 to index
    %c0_9 = arith.constant 0 : index
    %c0_10 = arith.constant 0 : index
    %30 = vector.load %arg4[%c0_8, %29, %c0_9, %c0_10] : memref<1x8x16x16xf32, #tpu.memory_space<vmem>>, vector<1x1x16x16xf32>
    %31 = vector.shape_cast %30 : vector<1x1x16x16xf32> to vector<16x16xf32>
    %32 = vector.broadcast %28 : f32 to vector<16x16xf32>
    %33 = arith.mulf %31, %32 : vector<16x16xf32>
    %34 = arith.addf %26, %33 : vector<16x16xf32>
    %c4_i32 = arith.constant 4 : i32
    %35 = arith.sitofp %c4_i32 : i32 to f32
    %36 = arith.addf %1, %35 : f32
    %c0_11 = arith.constant 0 : index
    %37 = arith.index_cast %c4_i32 : i32 to index
    %c0_12 = arith.constant 0 : index
    %c0_13 = arith.constant 0 : index
    %38 = vector.load %arg4[%c0_11, %37, %c0_12, %c0_13] : memref<1x8x16x16xf32, #tpu.memory_space<vmem>>, vector<1x1x16x16xf32>
    %39 = vector.shape_cast %38 : vector<1x1x16x16xf32> to vector<16x16xf32>
    %40 = vector.broadcast %36 : f32 to vector<16x16xf32>
    %41 = arith.mulf %39, %40 : vector<16x16xf32>
    %42 = arith.addf %34, %41 : vector<16x16xf32>
    %c5_i32 = arith.constant 5 : i32
    %43 = arith.sitofp %c5_i32 : i32 to f32
    %44 = arith.addf %1, %43 : f32
    %c0_14 = arith.constant 0 : index
    %45 = arith.index_cast %c5_i32 : i32 to index
    %c0_15 = arith.constant 0 : index
    %c0_16 = arith.constant 0 : index
    %46 = vector.load %arg4[%c0_14, %45, %c0_15, %c0_16] : memref<1x8x16x16xf32, #tpu.memory_space<vmem>>, vector<1x1x16x16xf32>
    %47 = vector.shape_cast %46 : vector<1x1x16x16xf32> to vector<16x16xf32>
    %48 = vector.broadcast %44 : f32 to vector<16x16xf32>
    %49 = arith.mulf %47, %48 : vector<16x16xf32>
    %50 = arith.addf %42, %49 : vector<16x16xf32>
    %c6_i32 = arith.constant 6 : i32
    %51 = arith.sitofp %c6_i32 : i32 to f32
    %52 = arith.addf %1, %51 : f32
    %c0_17 = arith.constant 0 : index
    %53 = arith.index_cast %c6_i32 : i32 to index
    %c0_18 = arith.constant 0 : index
    %c0_19 = arith.constant 0 : index
    %54 = vector.load %arg4[%c0_17, %53, %c0_18, %c0_19] : memref<1x8x16x16xf32, #tpu.memory_space<vmem>>, vector<1x1x16x16xf32>
    %55 = vector.shape_cast %54 : vector<1x1x16x16xf32> to vector<16x16xf32>
    %56 = vector.broadcast %52 : f32 to vector<16x16xf32>
    %57 = arith.mulf %55, %56 : vector<16x16xf32>
    %58 = arith.addf %50, %57 : vector<16x16xf32>
    %c7_i32 = arith.constant 7 : i32
    %59 = arith.sitofp %c7_i32 : i32 to f32
    %60 = arith.addf %1, %59 : f32
    %c0_20 = arith.constant 0 : index
    %61 = arith.index_cast %c7_i32 : i32 to index
    %c0_21 = arith.constant 0 : index
    %c0_22 = arith.constant 0 : index
    %62 = vector.load %arg4[%c0_20, %61, %c0_21, %c0_22] : memref<1x8x16x16xf32, #tpu.memory_space<vmem>>, vector<1x1x16x16xf32>
    %63 = vector.shape_cast %62 : vector<1x1x16x16xf32> to vector<16x16xf32>
    %64 = vector.broadcast %60 : f32 to vector<16x16xf32>
    %65 = arith.mulf %63, %64 : vector<16x16xf32>
    %66 = arith.addf %58, %65 : vector<16x16xf32>
    %c8_i32_23 = arith.constant 8 : i32
    %c0_i32_24 = arith.constant 0 : i32
    %67 = arith.cmpi eq, %arg3, %c0_i32_24 : i32
    %68 = arith.extui %67 : i1 to i32
    %c0_i32_25 = arith.constant 0 : i32
    %69 = arith.cmpi ne, %68, %c0_i32_25 : i32
    scf.if %69 {
      %c0_28 = arith.constant 0 : index
      %c0_29 = arith.constant 0 : index
      %c0_30 = arith.constant 0 : index
      %73 = vector.load %arg5[%c0_28, %c0_29, %c0_30] : memref<1x16x16xf32, #tpu.memory_space<vmem>>, vector<1x16x16xf32>
      %74 = vector.shape_cast %73 : vector<1x16x16xf32> to vector<16x16xf32>
      %75 = vector.shape_cast %66 : vector<16x16xf32> to vector<1x16x16xf32>
      tpu.vector_store %arg5[%c0_28, %c0_29, %c0_30], %75 {strides = array<i32>} : memref<1x16x16xf32, #tpu.memory_space<vmem>>, vector<1x16x16xf32>,
    } else {
    }
    %c0_i32_26 = arith.constant 0 : i32
    %70 = arith.cmpi sgt, %arg3, %c0_i32_26 : i32
    %71 = arith.extui %70 : i1 to i32
    %c0_i32_27 = arith.constant 0 : i32
    %72 = arith.cmpi ne, %71, %c0_i32_27 : i32
    scf.if %72 {
      %c0_28 = arith.constant 0 : index
      %c0_29 = arith.constant 0 : index
      %c0_30 = arith.constant 0 : index
      %73 = vector.load %arg5[%c0_28, %c0_29, %c0_30] : memref<1x16x16xf32, #tpu.memory_space<vmem>>, vector<1x16x16xf32>
      %74 = vector.shape_cast %73 : vector<1x16x16xf32> to vector<16x16xf32>
      %75 = arith.addf %74, %66 : vector<16x16xf32>
      %c0_31 = arith.constant 0 : index
      %c0_32 = arith.constant 0 : index
      %c0_33 = arith.constant 0 : index
      %76 = vector.load %arg5[%c0_31, %c0_32, %c0_33] : memref<1x16x16xf32, #tpu.memory_space<vmem>>, vector<1x16x16xf32>
      %77 = vector.shape_cast %76 : vector<1x16x16xf32> to vector<16x16xf32>
      %78 = vector.shape_cast %75 : vector<16x16xf32> to vector<1x16x16xf32>
      tpu.vector_store %arg5[%c0_31, %c0_32, %c0_33], %78 {strides = array<i32>} : memref<1x16x16xf32, #tpu.memory_space<vmem>>, vector<1x16x16xf32>,
    } else {
    }
    return
  }
  func.func @transform_0(%arg0: i32, %arg1: i32, %arg2: i32, %arg3: i32) -> (i32, i32, i32, i32) {
    %c0_i32 = arith.constant 0 : i32
    return %arg0, %arg3, %arg1, %arg2 : i32, i32, i32, i32
  }
  func.func @transform_1(%arg0: i32, %arg1: i32, %arg2: i32, %arg3: i32) -> (i32, i32, i32) {
    %c0_i32 = arith.constant 0 : i32
    return %arg0, %arg1, %arg2 : i32, i32, i32
  }
}

</mosaic_0001>

<bundles_post_ra>
// kernel: tpu_custom_call.1
= control target key start
LH: loop header
LB: loop body
LE: loop exit
PB: predicated region body
PF: predicated region fallthrough
CT: control target
= control target key end

     0   :  { %6 = vsyncpa [#allocation3], 0  ;;  %s773_s0 = inlined_call_operand.hbm [shape: f32[2,8,16,16], index: 0, kind: input, shape index: {}]   ;;  %s774_s1 = inlined_call_operand.hbm [shape: f32[2,16,16], index: 1, kind: output, shape index: {}]  }
   0x1   :  { %8 = vsyncpa [#allocation3 + $0x1], 0 }
   0x2   :  { %9 = vsyncpa [#allocation4], 0 }
   0x3   :  { %11 = vsyncpa [#allocation4 + $0x1], 0  ;;  %s608_s6 = smov 0   ;;  %s610_s7 = smov 0  }
   0x4   :  { %s612_s8 = smov 0   ;;  %s614_s9 = smov 0  }
   0x5   :  { %s616_s10 = smov 0   ;;  %s618_s11 = smov 0  }
   0x6 LB: > { %s385_s12 = sadd.s32 4294967295, %s590_s11   ;;  %s386_s13 = sadd.s32 4294967294, %s590_s11   ;;  %s590_s11 = sphi %s618_s11, %s17_s11   ;;  %s586_s10 = sphi %s616_s10, %s785_s10   ;;  %s582_s9 = sphi %s614_s9, %s784_s9   ;;  %s578_s8 = sphi %s612_s8, %s783_s8   ;;  %s574_s7 = sphi %s610_s7, %s782_s7   ;;  %s570_s6 = sphi %s608_s6, %s781_s6  }
   0x7   : > { %s43_s14 = sadd.s32 1, %s586_s10  ;;  %s56_s15 = sadd.s32 1, %s578_s8 }
   0x8   : > { %p45_p0 = scmp.ge.s32.totalorder %s43_s14, 2  ;;  %p63_p1 = scmp.ne.s32.totalorder %s578_s8, %s574_s7 }
   0x9   : > { %p64_p2 = scmp.eq.s32.totalorder %s590_s11, 0  ;;  %p69_p3 = scmp.ne.s32.totalorder %s574_s7, %s570_s6 }
   0xa   : > { %s787_s14 = smov (%p45_p0, %s43_s14), 0  ;;  %p70_p5 = scmp.eq.s32.totalorder %s385_s12, 0 }
   0xb   : > { %p649_p4 = por %p64_p2, %p63_p1  ;;  %s47_s17 = ssub.s32 %s586_s10, %s787_s14 }
   0xc   : > { %p97_p6 = scmp.eq.s32.totalorder %s385_s12, 1  ;;  %p54_p7 = scmp.eq.s32.totalorder %s47_s17, 0 }
   0xd   : > { %p655_p8 = por %p70_p5, %p69_p3  ;;  %p103_p10 = scmp.eq.s32.totalorder %s386_s13, 1 }
   0xe   : > { %p659_p9 = por %p97_p6, %p63_p1  ;;  %p428_p13 = scmp.lt.s32.totalorder %s590_s11, 2 }
   0xf   : > { %s664_s20 = scalar_select %p54_p7, %s578_s8, %s56_s15  }
  0x10   : > { %p666_p11 = por %p103_p10, %p69_p3  ;;  %s123_s22 = sand.u32 1, %s578_s8  }
  0x11   : > { %s389_s23 = sshll.u32 %s123_s22, 7  ;;  %s414_s24 = sshll.u32 %s586_s10, 11 }
  0x12   : > { %s139_s27 = scalar_lea.hbm %s773_s0, %s414_s24  ;;  %s127_s28 = scalar_lea.vmem [#allocation2], %s389_s23 }
  0x13   : > { %s140_s29 = sshll.u32 %s127_s28, 4  ;;  %p679_p0 = pnand %p428_p13, %p649_p4  ;;  %s141_s29 = int_to_ptr.vmem [resolvable:$true] %s140_s29 }
  0x14   : > { %p392_p1 = scmp.ge.s32.totalorder %s590_s11, 1  ;;  %s124_s2 = scalar_lea.sflag [#allocation3], %s123_s22 }
  0x15   : > { %p484_p2 = pneg %p679_p0  ;;  %s495_s3 = scalar_lea.vmem %s141_s29, 2048 }
  0x16   : > { %p496_p3 = scmp.ne.s32.totalorder %s141_s29, %s495_s3  ;;  %s592_s4 = smov [#allocation2]  }
  0x17   : > { %s500_s5 = sshll.u32 %s592_s4, 4  ;;  %s501_s5 = int_to_ptr.vmem [resolvable:$false] %s500_s5 }
  0x18   : > { %p498_p5 = pnand %p496_p3, %p484_p2  ;;  %s502_s12 = scalar_lea.vmem %s501_s5, 4096 }
  0x19   : > { %p503_p7 = scmp.lt.s32.totalorder %s141_s29, %s501_s5  ;;  %p504_p10 = scmp.lt.s32.totalorder %s502_s12, %s495_s3 }
  0x1a   : > { %p499_p6 = pneg %p498_p5 }
  0x1b   : > { %p505_p12 = por %p504_p10, %p503_p7 }
  0x1d   : > { %p506_p4 = pnand %p505_p12, %p499_p6 }
  0x1f   : > { %509 = shalt.err (!%p506_p4)
}
  0x20   : > { %s593_s13 = smov 128   ;;  %s594_s15 = smov 8  }
  0x21   : > { %423 = dma.hbm_to_vmem [thread:$0]  (!%p679_p0), %s139_s27, 2048, %s141_s29, %s124_s2, %s593_s13, %s593_s13, %s594_s15  }
  0x22   : > { %p148_p13 = scmp.lt.s32.totalorder %s590_s11, 3 }
  0x24   : > { %p149_p2 = pnand %p392_p1, %p148_p13 }
  0x25   : > { %s692_s16 = sand.u32 (!%p149_p2), 1, %s574_s7  }
  0x26   : > { %152 = sbr.rel (%p149_p2) target bundleno = 76 (0x4c), region = 24  ;;  %s393_s17 = sshll.u32 (!%p149_p2), %s692_s16, 7 }
  0x27   : > { %s155_s22 = scalar_lea.sflag (!%p149_p2), [#allocation3], %s692_s16  ;;  %s696_s23 = scalar_lea.vmem (!%p149_p2), [#allocation2], %s393_s17 }
  0x2b   : > { %561 = dma.done.wait (%p655_p8), %s155_s22, 2048  }
  0x2c   : > { %563 = vsyncadd (%p655_p8), %s155_s22, 4294965248  ;;  %v183_v0 = vld [vmem:[%s696_s23] sm:$0xff]  ;;  %v395_v1 = vld [vmem:[%s696_s23 + $0x10] sm:$0xff]  ;;  %s394_s18 = sshll.u32 %s692_s16, 4  ;;  %s415_s26 = sshll.u32 %s582_s9, 8  ;;  %vm257_vm0 = vcmask 130048  }
  0x2d   : > { %v397_v2 = vld [vmem:[%s696_s23 + $0x20] sm:$0xff]  ;;  %v186_v3 = vmul.f32 0.0, %v183_v0  ;;  %v399_v5 = vld [vmem:[%s696_s23 + $0x30] sm:$0xff]  ;;  %v184_v7 = vld [vmem:[%s696_s23 + $0x8] sm:$0xff]  ;;  %s176_s24 = scalar_lea.vmem [#allocation5], %s394_s18  ;;  %s725_s29 = scalar_lea.hbm %s774_s1, %s415_s26 }
  0x2e   : > { %v204_v4 = vmul.f32 2.0, %v397_v2  ;;  %v401_v6 = vld [vmem:[%s696_s23 + $0x40] sm:$0xff]  ;;  %v213_v9 = vmul.f32 3.0, %v399_v5  ;;  %v187_v10 = vmul.f32 0.0, %v184_v7  ;;  %v396_v11 = vld [vmem:[%s696_s23 + $0x18] sm:$0xff]  ;;  %v398_v12 = vld [vmem:[%s696_s23 + $0x28] sm:$0xff] }
  0x2f   : > { %v197_v8 = vadd.f32 %v395_v1, %v186_v3  ;;  %v400_v13 = vld [vmem:[%s696_s23 + $0x38] sm:$0xff]  ;;  %v403_v14 = vld [vmem:[%s696_s23 + $0x50] sm:$0xff]  ;;  %v205_v15 = vmul.f32 2.0, %v398_v12  ;;  %v402_v16 = vld [vmem:[%s696_s23 + $0x48] sm:$0xff]  ;;  %v222_v18 = vmul.f32 4.0, %v401_v6  ;;  %s288_s25 = sshll.u32 %s176_s24, 4  ;;  %s720_s25 = int_to_ptr.vmem [resolvable:$true] %s288_s25 }
  0x30   : > { %v198_v19 = vadd.f32 %v396_v11, %v187_v10  ;;  %v214_v20 = vmul.f32 3.0, %v400_v13  ;;  %v405_v21 = vld [vmem:[%s696_s23 + $0x60] sm:$0xff]  ;;  %v404_v22 = vld [vmem:[%s696_s23 + $0x58] sm:$0xff]  ;;  %v231_v24 = vmul.f32 5.0, %v403_v14  ;;  %v223_v26 = vmul.f32 4.0, %v402_v16  ;;  %v407_v27 = vld [vmem:[%s696_s23 + $0x70] sm:$0xff] }
  0x31   : > { %v206_v17 = vadd.f32 %v204_v4, %v197_v8  ;;  %v406_v28 = vld [vmem:[%s696_s23 + $0x68] sm:$0xff]  ;;  %v240_v30 = vmul.f32 6.0, %v405_v21  ;;  %v232_v32 = vmul.f32 5.0, %v404_v22  ;;  %v408_v33 = vld [vmem:[%s696_s23 + $0x78] sm:$0xff]  ;;  %v249_v35 = vmul.f32 7.0, %v407_v27  ;;  %s272_s30 = scalar_lea.sflag [#allocation4], %s692_s16 }
  0x32   : > { %v207_v25 = vadd.f32 %v205_v15, %v198_v19  ;;  %v241_v37 = vmul.f32 6.0, %v406_v28  ;;  %v250_v40 = vmul.f32 7.0, %v408_v33  ;;  %s510_s2 = scalar_lea.vmem %s720_s25, 256  ;;  %s595_s9 = smov [#allocation5]  }
  0x33   : > { %v215_v23 = vadd.f32 %v213_v9, %v206_v17  ;;  %p511_p8 = scmp.ne.s32.totalorder %s720_s25, %s510_s2  ;;  %s514_s3 = sshll.u32 %s595_s9, 4  ;;  %s515_s3 = int_to_ptr.vmem [resolvable:$false] %s514_s3 }
  0x34   : > { %v216_v31 = vadd.f32 %v214_v20, %v207_v25  ;;  %s516_s4 = scalar_lea.vmem %s515_s3, 512  ;;  %p517_p1 = scmp.lt.s32.totalorder %s720_s25, %s515_s3 }
  0x35   : > { %v224_v29 = vadd.f32 %v222_v18, %v215_v23  ;;  %p512_p12 = pnand %p511_p8, %p659_p9  ;;  %p518_p3 = scmp.lt.s32.totalorder %s516_s4, %s510_s2 }
  0x36   : > { %v225_v36 = vadd.f32 %v223_v26, %v216_v31 }
  0x37   : > { %v233_v34 = vadd.f32 %v231_v24, %v224_v29  ;;  %p513_p0 = pneg %p512_p12  ;;  %p519_p5 = por %p518_p3, %p517_p1 }
  0x38   : > { %v234_v39 = vadd.f32 %v232_v32, %v225_v36 }
  0x39   : > { %v242_v38 = vadd.f32 %v240_v30, %v233_v34  ;;  %p520_p6 = pnand %p519_p5, %p513_p0 }
  0x3a   : > { %v243_v42 = vadd.f32 %v241_v37, %v234_v39 }
  0x3b   : > { %v251_v41 = vadd.f32 %v249_v35, %v242_v38 }
  0x3c   : > { %v252_v43 = vadd.f32 %v250_v40, %v243_v42 }
  0x3d   : > { %258 = vst.msk [vmem:[%s176_s24] sm:$0xff] %vm257_vm0, %v251_v41 }
  0x3e   : > { %259 = vst.msk [vmem:[%s176_s24 + $0x8] sm:$0xff] %vm257_vm0, %v252_v43 }
  0x3f   : > { %523 = shalt.err (!%p520_p6)
}
  0x40   : > { %s524_s5 = scalar_lea.hbm %s725_s29, 256  ;;  %s528_s15 = scalar_lea.hbm %s774_s1, 512 }
  0x41   : > { %p525_p7 = scmp.ne.s32.totalorder %s725_s29, %s524_s5  ;;  %p529_p13 = scmp.lt.s32.totalorder %s725_s29, %s774_s1 }
  0x42   : > { %p530_p2 = scmp.lt.s32.totalorder %s528_s15, %s524_s5 }
  0x43   : > { %p526_p10 = pnand %p525_p7, %p659_p9 }
  0x44   : > { %p531_p8 = por %p530_p2, %p529_p13 }
  0x45   : > { %p527_p4 = pneg %p526_p10 }
  0x47   : > { %p532_p12 = pnand %p531_p8, %p527_p4 }
  0x49   : > { %535 = shalt.err (!%p532_p12)
}
  0x4a   : > { %s596_s23 = smov 128   ;;  %s597_s18 = smov 8  }
  0x4b   : > { %418 = dma.vmem_to_hbm [thread:$0]  (%p659_p9), %s720_s25, 256, %s725_s29, %s272_s30, %s596_s23, %s596_s23, %s597_s18  }
  0x4c PF: > { %s303_s24 = sand.u32 1, %s570_s6   ;;  %p780_p0 = scmp.ge.s32.totalorder %s590_s11, 2 }
  0x4d   : > { %s304_s26 = scalar_lea.sflag [#allocation4], %s303_s24 }
  0x4e   : > { %p425_p1 = pnand %p780_p0, %p666_p11 }
  0x50   : > { %p426_p3 = pneg %p425_p1 }
  0x52   : > { %565 = dma.done.wait (%p426_p3), %s304_s26, 256  }
  0x53   : > { %567 = vsyncadd (%p426_p3), %s304_s26, 4294967040  ;;  %s17_s11 = sadd.s32 1, %s590_s11   ;;  %s781_s6 = smov %s574_s7 }
  0x54   : > { %p14_p5 = scmp.ge.s32.totalorder %s17_s11, 4   ;;  %s782_s7 = smov %s578_s8 }
  0x55   : > { %s783_s8 = smov %s664_s20  ;;  %s784_s9 = smov %s586_s10 }
  0x56   : > { %s785_s10 = smov %s787_s14  ;;  %16 = sbr.rel (!%p14_p5) target bundleno = 6 (0x6), region = 84 }
  0x5b   :  { %309 = vsyncpa [#allocation3], 1 }
  0x5c   :  { %311 = vsyncpa [#allocation3 + $0x1], 1 }
  0x5d   :  { %312 = vsyncpa [#allocation4], 1 }
  0x5e   :  { %314 = vsyncpa [#allocation4 + $0x1], 1 }

</bundles_post_ra>
